<compile_context>
chip_gen: v7x
topology: tpu7x:2x2x1
jax: 0.10.0
libtpu: 0.0.40
codegen_flags: <defaults>
</compile_context>

<pallas_src>
import jax
import jax.numpy as jnp
from jax.experimental import pallas as pl
from jax.experimental.pallas import tpu as pltpu

NEG_SLOPE = 0.2
BN_EPS = 1e-5

# Architecture constants (ninput=32, layers="64-32", noutput=8).
NINPUT = 32
H1 = 64
H2 = 32
NOUTPUT = 8

PACK = 4  # 4-way lane-dense block-diagonal packing (rows packed along lanes)
KP = PACK * NINPUT   # 128  (packed input width / first-matmul K)
HP1 = PACK * H1      # 256  (packed hidden-1 width)
HP2 = PACK * H2      # 128  (packed hidden-2 width)


def _leaky_relu(x):
    return jnp.where(x > 0, x, NEG_SLOPE * x)


def mlp_d_kernel(x_ref, wpack_ref, vpack_ref, out_ref):
    # ---- unpack packed parameters (static, tile-aligned slices) ----
    w1 = wpack_ref[0:KP, :]                    # (128, 256) bf16, block-diag of 4x w1
    w2 = wpack_ref[KP:KP + HP1, 0:HP2]         # (256, 128) bf16, block-diag of 4x w2

    b1 = vpack_ref[0:1, :]                     # (1, 256) f32 (b1 tiled x4)
    b2 = vpack_ref[1:2, 0:HP2]                 # (1, 128)
    g2 = vpack_ref[2:3, 0:HP2]                 # (1, 128) BN gamma (tiled)
    beta2 = vpack_ref[3:4, 0:HP2]              # (1, 128) BN beta  (tiled)
    w3t = vpack_ref[4:5, 0:HP2]                # (1, 128) folded final weight (tiled)
    b3m = vpack_ref[5:6, 0:1]                  # (1, 1)   mean(b3)

    # x arrives in f32 and is cast to bf16 in-kernel (VPU cast, free slot).
    x = x_ref[...].astype(jnp.bfloat16)        # (N/4, 128) bf16
    n_rows = x_ref.shape[0] * PACK             # true batch size N
    inv_n = jnp.float32(1.0 / n_rows)

    # ---- layer1: Linear (bf16 MXU, f32 accumulate) + LeakyReLU ----
    h1 = jnp.dot(x, w1, preferred_element_type=jnp.float32) + b1        # (N/4, 256) f32
    h1 = _leaky_relu(h1)

    # ---- layer2: Linear ----
    h2 = jnp.dot(h1.astype(jnp.bfloat16), w2,
                 preferred_element_type=jnp.float32) + b2               # (N/4, 128) f32

    # ---- BatchNorm1d (training-mode batch stats), single fused reduction ----
    stats = jnp.sum(jnp.concatenate([h2, h2 * h2], axis=1),
                    axis=0, keepdims=True)                              # (1, 256)
    s = stats[:, 0:HP2]                                                 # per-group sums
    ss = stats[:, HP2:2 * HP2]                                          # per-group sumsq
    # Fold the 4 lane groups so EVERY lane holds the per-channel total (also serves as
    # the broadcast needed for normalization).  Two XLU rotates + adds.
    s = s + pltpu.roll(s, shift=2 * H2, axis=1)
    s = s + pltpu.roll(s, shift=H2, axis=1)
    ss = ss + pltpu.roll(ss, shift=2 * H2, axis=1)
    ss = ss + pltpu.roll(ss, shift=H2, axis=1)

    mu = s * inv_n
    var = jnp.maximum(ss * inv_n - mu * mu, 0.0)    # biased var (PyTorch train-mode norm)
    scale = jax.lax.rsqrt(var + BN_EPS) * g2
    h2 = (h2 - mu) * scale + beta2
    h2 = _leaky_relu(h2)                                                # (N/4, 128)

    # ---- folded final Linear + torch.mean(y):
    #   mean(h2 @ w3 + b3) == (1/N) * sum_{n,c} h2[n,c] * (w3 @ 1/nout)[c] + mean(b3)
    acc = jnp.sum(h2 * w3t, axis=0, keepdims=True)                      # (1, 128)
    out_ref[...] = jnp.sum(acc, axis=1, keepdims=True) * inv_n + b3m    # (1, 1)


def pack_params(params):
    """Pack the 8 parameter tensors into one bf16 block-diagonal weight slab and one f32
    vector slab (lane-tiled for the 4-way packed layout)."""
    (w1, b1, w2, b2, g2, beta2, w3, b3) = params

    # Fold the final Linear + global mean into a length-H2 row and a scalar.
    w3_red = (w3 @ jnp.full((NOUTPUT, 1), 1.0 / NOUTPUT, jnp.float32)).T   # (1, H2)
    b3_mean = jnp.mean(b3)

    # Block-diagonal (4-way) weights -> lane-dense intermediates.
    eye = jnp.eye(PACK, dtype=jnp.float32)
    w1_blk = jnp.kron(eye, w1)                 # (128, 256)
    w2_blk = jnp.kron(eye, w2)                 # (256, 128)

    wpack = jnp.zeros((KP + HP1, HP1), jnp.float32)        # (384, 256)
    wpack = wpack.at[0:KP, :].set(w1_blk)
    wpack = wpack.at[KP:KP + HP1, 0:HP2].set(w2_blk)
    wpack = wpack.astype(jnp.bfloat16)

    vpack = jnp.zeros((6, HP1), jnp.float32)               # (6, 256)
    vpack = vpack.at[0:1, :].set(jnp.tile(b1, (1, PACK)))
    vpack = vpack.at[1:2, 0:HP2].set(jnp.tile(b2, (1, PACK)))
    vpack = vpack.at[2:3, 0:HP2].set(jnp.tile(g2, (1, PACK)))
    vpack = vpack.at[3:4, 0:HP2].set(jnp.tile(beta2, (1, PACK)))
    vpack = vpack.at[4:5, 0:HP2].set(jnp.tile(w3_red, (1, PACK)))
    vpack = vpack.at[5, 0].set(b3_mean)
    return wpack, vpack


def mlp_d_forward(x, wpack, vpack):
    n = x.shape[0]
    # TODO(synk): ragged batches (n % PACK != 0) need zero-padding + masked BN stats.
    assert n % PACK == 0, "batch size must be a multiple of the lane-pack factor"
    # Free (metadata-only) reshape in the wrapper: 4 consecutive rows packed along lanes.
    xp = x.reshape(n // PACK, KP)              # stays f32; cast to bf16 happens in-kernel
    vmem = pl.BlockSpec(memory_space=pltpu.MemorySpace.VMEM)
    out = pl.pallas_call(
        mlp_d_kernel,
        out_shape=jax.ShapeDtypeStruct((1, 1), jnp.float32),
        in_specs=[vmem, vmem, vmem],
        out_specs=vmem,   # (1,1) VMEM tile; SMEM scalar out is a sub-% win, kept simple
    )(xp, wpack, vpack)
    return out[0, 0]


def init_params(key, ninput, noutput, layers_str):
    """Deterministic init matching MLP_D.init_weights: weight~N(0,0.02), bias=0.
    BatchNorm1d also has weight/bias attrs, so its gamma~N(0,0.02), beta=0."""
    init_std = 0.02
    sizes = [ninput] + [int(s) for s in layers_str.split('-')]
    h1, h2 = sizes[1], sizes[2]
    k1, k2, k3, k4 = jax.random.split(key, 4)
    w1 = init_std * jax.random.normal(k1, (sizes[0], h1), jnp.float32)   # (in, out)
    b1 = jnp.zeros((1, h1), jnp.float32)
    w2 = init_std * jax.random.normal(k2, (h1, h2), jnp.float32)
    b2 = jnp.zeros((1, h2), jnp.float32)
    g2 = init_std * jax.random.normal(k3, (1, h2), jnp.float32)          # BN gamma
    beta2 = jnp.zeros((1, h2), jnp.float32)                              # BN beta
    w3 = init_std * jax.random.normal(k4, (h2, noutput), jnp.float32)
    b3 = jnp.zeros((1, noutput), jnp.float32)
    return (w1, b1, w2, b2, g2, beta2, w3, b3)


def reference_forward(x, params):
    """PyTorch-ordered reference (two-pass BN var, full final Linear, mean over all),
    with the same bf16 matmul-operand contract as the kernel."""
    (w1, b1, w2, b2, g2, beta2, w3, b3) = params
    h = jnp.dot(x.astype(jnp.bfloat16), w1.astype(jnp.bfloat16),
                preferred_element_type=jnp.float32) + b1
    h = jnp.where(h > 0, h, NEG_SLOPE * h)
    h = jnp.dot(h.astype(jnp.bfloat16), w2.astype(jnp.bfloat16),
                preferred_element_type=jnp.float32) + b2
    mu = jnp.mean(h, axis=0, keepdims=True)
    var = jnp.mean((h - mu) ** 2, axis=0, keepdims=True)
    h = (h - mu) * jax.lax.rsqrt(var + BN_EPS) * g2 + beta2
    h = jnp.where(h > 0, h, NEG_SLOPE * h)
    y = h @ w3 + b3
    return jnp.mean(y)


if __name__ == "__main__":
    ninput, noutput = NINPUT, NOUTPUT
    layers_str = "64-32"
    batch = 64

    key = jax.random.PRNGKey(0)
    kx, kp = jax.random.split(key)
    x = jax.random.normal(kx, (batch, ninput), jnp.float32)
    params = init_params(kp, ninput, noutput, layers_str)
    wpack, vpack = pack_params(params)

    out = mlp_d_forward(x, wpack, vpack)
    out = jax.block_until_ready(out)

    ref = reference_forward(x, params)
    assert out.shape == ()  # scalar, like torch.mean
    # NOTE: single-pass E[h^2]-mu^2 variance (f32) can deviate from the two-pass PyTorch
    # variance for badly scaled inputs; fine for normalized inputs / this init.
    assert jnp.allclose(out, ref, atol=2e-5, rtol=1e-3), (out, ref)

    print("KERNEL_OK")
</pallas_src>

<mosaic_0001>
module attributes {stable_mosaic.version = 11 : i64} {
  func.func @mlp_d_kernel(%arg0: memref<16x128xf32, #tpu.memory_space<vmem>>, %arg1: memref<384x256xbf16, #tpu.memory_space<vmem>>, %arg2: memref<6x256xf32, #tpu.memory_space<vmem>>, %arg3: memref<1x1xf32, #tpu.memory_space<vmem>>) attributes {dimension_semantics = [], scalar_prefetch = 0 : i64, scratch_operands = 0 : i64, tpu.core_type = #tpu.core_type<tc>} {
    %c0 = arith.constant 0 : index
    %c0_0 = arith.constant 0 : index
    %0 = vector.load %arg1[%c0, %c0_0] : memref<384x256xbf16, #tpu.memory_space<vmem>>, vector<128x256xbf16>
    %c128 = arith.constant 128 : index
    %c0_1 = arith.constant 0 : index
    %1 = vector.load %arg1[%c128, %c0_1] : memref<384x256xbf16, #tpu.memory_space<vmem>>, vector<256x128xbf16>
    %c0_2 = arith.constant 0 : index
    %c0_3 = arith.constant 0 : index
    %2 = vector.load %arg2[%c0_2, %c0_3] : memref<6x256xf32, #tpu.memory_space<vmem>>, vector<1x256xf32>
    %c1 = arith.constant 1 : index
    %c0_4 = arith.constant 0 : index
    %3 = vector.load %arg2[%c1, %c0_4] : memref<6x256xf32, #tpu.memory_space<vmem>>, vector<1x128xf32>
    %c2 = arith.constant 2 : index
    %c0_5 = arith.constant 0 : index
    %4 = vector.load %arg2[%c2, %c0_5] : memref<6x256xf32, #tpu.memory_space<vmem>>, vector<1x128xf32>
    %c3 = arith.constant 3 : index
    %c0_6 = arith.constant 0 : index
    %5 = vector.load %arg2[%c3, %c0_6] : memref<6x256xf32, #tpu.memory_space<vmem>>, vector<1x128xf32>
    %c4 = arith.constant 4 : index
    %c0_7 = arith.constant 0 : index
    %6 = vector.load %arg2[%c4, %c0_7] : memref<6x256xf32, #tpu.memory_space<vmem>>, vector<1x128xf32>
    %c5 = arith.constant 5 : index
    %c0_8 = arith.constant 0 : index
    %7 = vector.load %arg2[%c5, %c0_8] : memref<6x256xf32, #tpu.memory_space<vmem>>, vector<1x1xf32>
    %c0_9 = arith.constant 0 : index
    %c0_10 = arith.constant 0 : index
    %8 = vector.load %arg0[%c0_9, %c0_10] : memref<16x128xf32, #tpu.memory_space<vmem>>, vector<16x128xf32>
    %9 = arith.truncf %8 : vector<16x128xf32> to vector<16x128xbf16>
    %cst = arith.constant dense<0.000000e+00> : vector<16x256xf32>
    %10 = tpu.matmul %9, %0, %cst {dimension_numbers = #tpu.dot_dimension_numbers<[1], [0], [0], [1], [0, 0, 1, 1], [], []>} : vector<16x128xbf16>, vector<128x256xbf16>, vector<16x256xf32> -> vector<16x256xf32>
    %11 = vector.broadcast %2 : vector<1x256xf32> to vector<16x256xf32>
    %12 = arith.addf %10, %11 : vector<16x256xf32>
    %cst_11 = arith.constant 0.000000e+00 : f32
    %13 = vector.broadcast %cst_11 : f32 to vector<16x256xf32>
    %14 = arith.cmpf ogt, %12, %13 : vector<16x256xf32>
    %cst_12 = arith.constant 2.000000e-01 : f32
    %15 = vector.broadcast %cst_12 : f32 to vector<16x256xf32>
    %16 = arith.mulf %15, %12 : vector<16x256xf32>
    %17 = arith.select %14, %12, %16 : vector<16x256xi1>, vector<16x256xf32>
    %18 = arith.truncf %17 : vector<16x256xf32> to vector<16x256xbf16>
    %cst_13 = arith.constant dense<0.000000e+00> : vector<16x128xf32>
    %19 = tpu.matmul %18, %1, %cst_13 {dimension_numbers = #tpu.dot_dimension_numbers<[1], [0], [0], [1], [0, 0, 1, 1], [], []>} : vector<16x256xbf16>, vector<256x128xbf16>, vector<16x128xf32> -> vector<16x128xf32>
    %20 = vector.broadcast %3 : vector<1x128xf32> to vector<16x128xf32>
    %21 = arith.addf %19, %20 : vector<16x128xf32>
    %22 = arith.mulf %21, %21 : vector<16x128xf32>
    %23 = tpu.concatenate %21, %22 in 1 : vector<16x128xf32>, vector<16x128xf32> -> vector<16x256xf32>
    %cst_14 = arith.constant dense<0.000000e+00> : vector<256xf32>
    %24 = vector.multi_reduction <add>, %23, %cst_14 [0] : vector<16x256xf32> to vector<256xf32>
    %25 = vector.shape_cast %24 : vector<256xf32> to vector<1x256xf32>
    %26 = vector.extract_strided_slice %25 {offsets = [0, 0], sizes = [1, 128], strides = [1, 1]} : vector<1x256xf32> to vector<1x128xf32>
    %27 = vector.extract_strided_slice %25 {offsets = [0, 128], sizes = [1, 128], strides = [1, 1]} : vector<1x256xf32> to vector<1x128xf32>
    %c64_i32 = arith.constant 64 : i32
    %28 = tpu.dynamic_rotate %26 by %c64_i32 dim 1 : vector<1x128xf32>, i32 -> vector<1x128xf32>
    %29 = arith.addf %26, %28 : vector<1x128xf32>
    %c32_i32 = arith.constant 32 : i32
    %30 = tpu.dynamic_rotate %29 by %c32_i32 dim 1 : vector<1x128xf32>, i32 -> vector<1x128xf32>
    %31 = arith.addf %29, %30 : vector<1x128xf32>
    %c64_i32_15 = arith.constant 64 : i32
    %32 = tpu.dynamic_rotate %27 by %c64_i32_15 dim 1 : vector<1x128xf32>, i32 -> vector<1x128xf32>
    %33 = arith.addf %27, %32 : vector<1x128xf32>
    %c32_i32_16 = arith.constant 32 : i32
    %34 = tpu.dynamic_rotate %33 by %c32_i32_16 dim 1 : vector<1x128xf32>, i32 -> vector<1x128xf32>
    %35 = arith.addf %33, %34 : vector<1x128xf32>
    %cst_17 = arith.constant 1.562500e-02 : f32
    %36 = vector.broadcast %cst_17 : f32 to vector<1x128xf32>
    %37 = arith.mulf %31, %36 : vector<1x128xf32>
    %cst_18 = arith.constant 1.562500e-02 : f32
    %38 = vector.broadcast %cst_18 : f32 to vector<1x128xf32>
    %39 = arith.mulf %35, %38 : vector<1x128xf32>
    %40 = arith.mulf %37, %37 : vector<1x128xf32>
    %41 = arith.subf %39, %40 : vector<1x128xf32>
    %cst_19 = arith.constant 0.000000e+00 : f32
    %42 = vector.broadcast %cst_19 : f32 to vector<1x128xf32>
    %43 = arith.maximumf %41, %42 : vector<1x128xf32>
    %cst_20 = arith.constant 9.99999974E-6 : f32
    %44 = vector.broadcast %cst_20 : f32 to vector<1x128xf32>
    %45 = arith.addf %43, %44 : vector<1x128xf32>
    %46 = math.rsqrt %45 : vector<1x128xf32>
    %47 = arith.mulf %46, %4 : vector<1x128xf32>
    %48 = vector.broadcast %37 : vector<1x128xf32> to vector<16x128xf32>
    %49 = arith.subf %21, %48 : vector<16x128xf32>
    %50 = vector.broadcast %47 : vector<1x128xf32> to vector<16x128xf32>
    %51 = arith.mulf %49, %50 : vector<16x128xf32>
    %52 = vector.broadcast %5 : vector<1x128xf32> to vector<16x128xf32>
    %53 = arith.addf %51, %52 : vector<16x128xf32>
    %cst_21 = arith.constant 0.000000e+00 : f32
    %54 = vector.broadcast %cst_21 : f32 to vector<16x128xf32>
    %55 = arith.cmpf ogt, %53, %54 : vector<16x128xf32>
    %cst_22 = arith.constant 2.000000e-01 : f32
    %56 = vector.broadcast %cst_22 : f32 to vector<16x128xf32>
    %57 = arith.mulf %56, %53 : vector<16x128xf32>
    %58 = arith.select %55, %53, %57 : vector<16x128xi1>, vector<16x128xf32>
    %59 = vector.broadcast %6 : vector<1x128xf32> to vector<16x128xf32>
    %60 = arith.mulf %58, %59 : vector<16x128xf32>
    %cst_23 = arith.constant dense<0.000000e+00> : vector<128xf32>
    %61 = vector.multi_reduction <add>, %60, %cst_23 [0] : vector<16x128xf32> to vector<128xf32>
    %62 = vector.shape_cast %61 : vector<128xf32> to vector<1x128xf32>
    %cst_24 = arith.constant dense<0.000000e+00> : vector<1xf32>
    %63 = vector.multi_reduction <add>, %62, %cst_24 [1] : vector<1x128xf32> to vector<1xf32>
    %64 = vector.shape_cast %63 : vector<1xf32> to vector<1x1xf32>
    %cst_25 = arith.constant 1.562500e-02 : f32
    %65 = vector.broadcast %cst_25 : f32 to vector<1x1xf32>
    %66 = arith.mulf %64, %65 : vector<1x1xf32>
    %67 = arith.addf %66, %7 : vector<1x1xf32>
    %c0_26 = arith.constant 0 : index
    %c0_27 = arith.constant 0 : index
    %68 = vector.load %arg3[%c0_26, %c0_27] : memref<1x1xf32, #tpu.memory_space<vmem>>, vector<1x1xf32>
    tpu.vector_store %arg3[%c0_26, %c0_27], %67 {strides = array<i32>} : memref<1x1xf32, #tpu.memory_space<vmem>>, vector<1x1xf32>,
    return
  }
}

</mosaic_0001>

<bundles_post_ra>
// kernel: tpu_custom_call.1
= control target key start
LH: loop header
LB: loop body
LE: loop exit
PB: predicated region body
PF: predicated region fallthrough
CT: control target
= control target key end

     0   :  { %8 = vsyncpa [#allocation3], 0  ;;  %s772_s0 = inlined_call_operand.hbm [shape: f32[16,128], index: 0, kind: input, shape index: {}]   ;;  %s773_s1 = inlined_call_operand.hbm [shape: bf16[384,256], index: 1, kind: input, shape index: {}]   ;;  %s774_s2 = inlined_call_operand.hbm [shape: f32[6,256], index: 2, kind: input, shape index: {}]   ;;  %s775_s3 = inlined_call_operand.hbm [shape: f32[1,1], index: 3, kind: output, shape index: {}]  }
   0x1   :  { %9 = vsyncpa [#allocation6], 0 }
   0x2   :  { %10 = vsyncpa [#allocation4], 0  ;;  %s683_s12 = smov [#allocation5]   ;;  %s684_s14 = smov [#allocation2]  }
   0x3   :  { %s28_s13 = sshll.u32 %s683_s12, 4  ;;  %s16_s15 = sshll.u32 %s684_s14, 4  ;;  %s29_s13 = int_to_ptr.vmem [resolvable:$true] %s28_s13  ;;  %s712_s15 = int_to_ptr.vmem [resolvable:$true] %s16_s15 }
   0x4   :  { %s589_s18 = scalar_lea.hbm %s773_s1, 6144 }
   0x5   :  { %p590_p0 = scmp.ne.s32.totalorder %s773_s1, %s589_s18  ;;  %p593_p1 = scmp.lt.u32.totalorder %s589_s18, %s773_s1 }
   0x7   :  { %p595_p2 = pnand %p593_p1, %p590_p0 }
   0x9   :  { %598 = shalt.err (!%p595_p2)
}
   0xa   :  { %s599_s23 = scalar_lea.vmem %s29_s13, 6144  ;;  %p604_p4 = scmp.lt.s32.totalorder %s29_s13, %s29_s13 }
   0xb   :  { %p600_p3 = scmp.ne.s32.totalorder %s29_s13, %s599_s23  ;;  %p605_p5 = scmp.lt.s32.totalorder %s599_s23, %s599_s23 }
   0xd   :  { %p606_p6 = por %p605_p5, %p604_p4 }
   0xf   :  { %p607_p7 = pnand %p606_p6, %p600_p3 }
  0x11   :  { %610 = shalt.err (!%p607_p7)
}
  0x12   :  { %s685_s24 = smov 128   ;;  %s686_s25 = smov 8  }
  0x13   :  { %34 = dma.hbm_to_vmem [thread:$0]  %s773_s1, 6144, %s29_s13, [#allocation6], %s685_s24, %s685_s24, %s686_s25  }
  0x14   :  { %s611_s30 = scalar_lea.hbm %s772_s0, 256 }
  0x15   :  { %p612_p8 = scmp.ne.s32.totalorder %s772_s0, %s611_s30  ;;  %p615_p9 = scmp.lt.u32.totalorder %s611_s30, %s772_s0 }
  0x17   :  { %p617_p10 = pnand %p615_p9, %p612_p8 }
  0x19   :  { %620 = shalt.err (!%p617_p10)
}
  0x1a   :  { %s621_s8 = scalar_lea.vmem %s712_s15, 256  ;;  %p626_p12 = scmp.lt.s32.totalorder %s712_s15, %s712_s15 }
  0x1b   :  { %p622_p11 = scmp.ne.s32.totalorder %s712_s15, %s621_s8  ;;  %p627_p13 = scmp.lt.s32.totalorder %s621_s8, %s621_s8 }
  0x1d   :  { %p628_p0 = por %p627_p13, %p626_p12 }
  0x1f   :  { %p629_p1 = pnand %p628_p0, %p622_p11 }
  0x21   :  { %632 = shalt.err (!%p629_p1)
}
  0x22   :  { %22 = dma.hbm_to_vmem [thread:$0]  %s772_s0, 256, %s712_s15, [#allocation3], %s685_s24, %s685_s24, %s686_s25  }
  0x23   :  { %s687_s10 = smov [#allocation7]   ;;  %s633_s14 = scalar_lea.hbm %s774_s2, 256 }
  0x24   :  { %s41_s11 = sshll.u32 %s687_s10, 4  ;;  %p634_p2 = scmp.ne.s32.totalorder %s774_s2, %s633_s14  ;;  %s42_s11 = int_to_ptr.vmem [resolvable:$true] %s41_s11 }
  0x25   :  { %p637_p3 = scmp.lt.u32.totalorder %s633_s14, %s774_s2 }
  0x27   :  { %p639_p4 = pnand %p637_p3, %p634_p2 }
  0x29   :  { %642 = shalt.err (!%p639_p4)
}
  0x2a   :  { %s643_s20 = scalar_lea.vmem %s42_s11, 256  ;;  %p648_p6 = scmp.lt.s32.totalorder %s42_s11, %s42_s11 }
  0x2b   :  { %p644_p5 = scmp.ne.s32.totalorder %s42_s11, %s643_s20  ;;  %p649_p7 = scmp.lt.s32.totalorder %s643_s20, %s643_s20 }
  0x2d   :  { %p650_p8 = por %p649_p7, %p648_p6 }
  0x2f   :  { %p651_p9 = pnand %p650_p8, %p644_p5 }
  0x31   :  { %654 = shalt.err (!%p651_p9)
}
  0x32   :  { %44 = dma.hbm_to_vmem [thread:$0]  %s774_s2, 256, %s42_s11, [#allocation6]  }
  0x33   :  { %677 = dma.done.wait [#allocation3], 256  }
  0x34   :  { %678 = vsyncadd [#allocation3], 4294967040 }
  0x35   :  { %679 = dma.done.wait [#allocation6], 6400  }
  0x36   :  { %680 = vsyncadd [#allocation6], 4294960896  ;;  %v688_v0 = vmov 0   ;;  %v547_v1 = vld [vmem:[#allocation5 + $0x4] ss:$8 sps:$4 sm:$0xff]   ;;  %v109_v26 = vld [vmem:[#allocation2] sm:$0xff]  ;;  %v113_v36 = vlaneseq }
  0x37   :  { %235 = vmatprep.mubr.bf16.mxu0 %v688_v0  ;;  %v549_v2 = vld [vmem:[#allocation5] ss:$8 sps:$4 sm:$0xff]   ;;  %203 = vmatprep.subr.bf16.mxu0 %v547_v1  ;;  %v550_v3 = vld [vmem:[#allocation5 + $0x14] ss:$8 sps:$4 sm:$0xff]   ;;  %v552_v4 = vld [vmem:[#allocation5 + $0x10] ss:$8 sps:$4 sm:$0xff]  }
  0x38   :  { %204 = vmatpush1.bf16.msra.mxu0 %v549_v2  ;;  %v553_v5 = vld [vmem:[#allocation5 + $0x24] ss:$8 sps:$4 sm:$0xff]   ;;  %v555_v6 = vld [vmem:[#allocation5 + $0x20] ss:$8 sps:$4 sm:$0xff]   ;;  %v556_v7 = vld [vmem:[#allocation5 + $0x34] ss:$8 sps:$4 sm:$0xff]  }
  0x39   :  { %205 = vmatprep.subr.bf16.mxu0 %v550_v3  ;;  %v558_v8 = vld [vmem:[#allocation5 + $0x30] ss:$8 sps:$4 sm:$0xff]   ;;  %v559_v9 = vld [vmem:[#allocation5 + $0x44] ss:$8 sps:$4 sm:$0xff]   ;;  %v571_v10 = vld [vmem:[#allocation5 + $0x100] ss:$8 sps:$4 sm:$0xff]  }
  0x3a   :  { %v561_v11 = vld [vmem:[#allocation5 + $0x40] ss:$8 sps:$4 sm:$0xff]   ;;  %v562_v13 = vld [vmem:[#allocation5 + $0x54] ss:$8 sps:$4 sm:$0xff]   ;;  %516 = vmatprep.subr.bf16.mxu1 %v571_v10  ;;  %v573_v14 = vld [vmem:[#allocation5 + $0x110] ss:$8 sps:$4 sm:$0xff]  }
  0x3b   :  { %v572_v12 = vld [vmem:[#allocation5 + $0x80] ss:$8 sps:$4 sm:$0xff]   ;;  %v574_v15 = vld [vmem:[#allocation5 + $0x90] ss:$8 sps:$4 sm:$0xff]   ;;  %v565_v18 = vld [vmem:[#allocation5 + $0x64] ss:$8 sps:$4 sm:$0xff]  }
  0x3c   :  { %206 = vmatpush1.bf16.msra.mxu0 %v552_v4  ;;  %517 = vmatpush3.bf16.msra.mxu1 %v572_v12  ;;  %v575_v16 = vld [vmem:[#allocation5 + $0x120] ss:$8 sps:$4 sm:$0xff]   ;;  %v564_v17 = vld [vmem:[#allocation5 + $0x50] ss:$8 sps:$4 sm:$0xff]   ;;  %v568_v23 = vld [vmem:[#allocation5 + $0x74] ss:$8 sps:$4 sm:$0xff]  }
  0x3d   :  { %207 = vmatprep.subr.bf16.mxu0 %v553_v5  ;;  %518 = vmatprep.subr.bf16.mxu1 %v573_v14  ;;  %v576_v19 = vld [vmem:[#allocation5 + $0xa0] ss:$8 sps:$4 sm:$0xff]   ;;  %v577_v20 = vld [vmem:[#allocation5 + $0x130] ss:$8 sps:$4 sm:$0xff]   ;;  %v114_v37 = vshrl.u32 %v113_v36, 7  ;;  %s689_s2 = smov 64  }
  0x3e   :  { %v567_v21 = vld [vmem:[#allocation5 + $0x60] ss:$8 sps:$4 sm:$0xff]   ;;  %v578_v22 = vld [vmem:[#allocation5 + $0xb0] ss:$8 sps:$4 sm:$0xff]   ;;  %s690_s21 = smov 32   ;;  %s691_s22 = smov [#allocation8]  }
  0x3f   :  { %v579_v24 = vld [vmem:[#allocation5 + $0x140] ss:$8 sps:$4 sm:$0xff]   ;;  %v570_v25 = vld [vmem:[#allocation5 + $0x70] ss:$8 sps:$4 sm:$0xff]   ;;  %v755_v38 = vsub.s32 0, %v114_v37  ;;  %v119_v40 = vsub.s32 1, %v114_v37 }
  0x40   :  { %208 = vmatpush1.bf16.msra.mxu0 %v555_v6  ;;  %519 = vmatpush3.bf16.msra.mxu1 %v574_v15  ;;  %v110_v27 = vld [vmem:[#allocation2 + $0x8] sm:$0xff]  ;;  %v580_v28 = vld [vmem:[#allocation5 + $0xc0] ss:$8 sps:$4 sm:$0xff]   ;;  %s474_s23 = sshll.u32 %s691_s22, 4  ;;  %vm466_vm6 = vcmask 0   ;;  %s475_s23 = int_to_ptr.vmem [resolvable:$true] %s474_s23 }
  0x41   :  { %209 = vmatprep.subr.bf16.mxu0 %v556_v7  ;;  %520 = vmatprep.subr.bf16.mxu1 %v575_v16  ;;  %v111_v29 = vpack.c.bf16 %v110_v27, %v109_v26  ;;  %v581_v30 = vld [vmem:[#allocation5 + $0x150] ss:$8 sps:$4 sm:$0xff]   ;;  %v583_v32 = vld [vmem:[#allocation5 + $0x160] ss:$8 sps:$4 sm:$0xff]   ;;  %s655_s24 = scalar_lea.vmem %s475_s23, 16  ;;  %s659_s25 = scalar_lea.vmem %s475_s23, 32 }
  0x42   :  { %v582_v31 = vld [vmem:[#allocation5 + $0xd0] ss:$8 sps:$4 sm:$0xff]   ;;  %v584_v33 = vld [vmem:[#allocation5 + $0xe0] ss:$8 sps:$4 sm:$0xff]   ;;  %p656_p10 = scmp.ne.s32.totalorder %s475_s23, %s655_s24  ;;  %p660_p11 = scmp.lt.s32.totalorder %s475_s23, %s475_s23 }
  0x43   :  { %v585_v34 = vld [vmem:[#allocation5 + $0x170] ss:$8 sps:$4 sm:$0xff]   ;;  %v103_v39 = vld [vmem:[#allocation7] ss:$8 sm:$0x3]  ;;  %p661_p12 = scmp.lt.s32.totalorder %s659_s25, %s655_s24 }
  0x44   :  { %210 = vmatpush1.bf16.msra.mxu0 %v558_v8  ;;  %521 = vmatpush3.bf16.msra.mxu1 %v576_v19  ;;  %v586_v35 = vld [vmem:[#allocation5 + $0xf0] ss:$8 sps:$4 sm:$0xff]   ;;  %v116_v41 = vrot.slane %v103_v39, %v755_v38  ;;  %v120_v42 = vrot.slane %v103_v39, %v119_v40  ;;  %v104_v62 = vld [vmem:[#allocation7 + $0x1] ss:$0 sm:$0xff]  ;;  %v105_v36 = vld [vmem:[#allocation7 + $0x2] ss:$0 sm:$0xff] }
  0x45   :  { %211 = vmatprep.subr.bf16.mxu0 %v559_v9  ;;  %522 = vmatprep.subr.bf16.mxu1 %v577_v20  ;;  %p662_p13 = por %p661_p12, %p660_p11 }
  0x47   :  { %p663_p0 = pnand %p662_p13, %p656_p10 }
  0x48   :  { %212 = vmatpush1.bf16.msra.mxu0 %v561_v11  ;;  %523 = vmatpush3.bf16.msra.mxu1 %v578_v22 }
  0x49   :  { %213 = vmatprep.subr.bf16.mxu0 %v562_v13  ;;  %524 = vmatprep.subr.bf16.mxu1 %v579_v24 }
  0x4c   :  { %214 = vmatpush1.bf16.msra.mxu0 %v564_v17  ;;  %525 = vmatpush3.bf16.msra.mxu1 %v580_v28 }
  0x4d   :  { %215 = vmatprep.subr.bf16.mxu0 %v565_v18  ;;  %526 = vmatprep.subr.bf16.mxu1 %v581_v30 }
  0x50   :  { %216 = vmatpush1.bf16.msra.mxu0 %v567_v21  ;;  %527 = vmatpush3.bf16.msra.mxu1 %v582_v31 }
  0x51   :  { %217 = vmatprep.subr.bf16.mxu0 %v568_v23  ;;  %528 = vmatprep.subr.bf16.mxu1 %v583_v32 }
  0x54   :  { %218 = vmatpush1.bf16.msra.mxu0 %v570_v25  ;;  %529 = vmatpush3.bf16.msra.mxu1 %v584_v33 }
  0x55   :  { %530 = vmatprep.subr.bf16.mxu1 %v585_v34 }
  0x57   :  { %236 = vmatmul.mubr.bf16.vlgmr.msra.gmra.mrb[0].mxu0 %v111_v29 }
  0x58   :  { %531 = vmatpush3.bf16.msra.mxu1 %v586_v35 }
 0x12a   :  { %v237_v43 = vpop.f32.mrb[0].mxu0 }
 0x12b   :  { %v238_v44 = vadd.f32 %v237_v43, %v116_v41  ;;  %v239_v45 = vpop.f32.mrb[1].mxu0 }
 0x12c   :  { %v240_v46 = vadd.f32 %v239_v45, %v120_v42  ;;  %v241_v47 = vpop.f32.mrb[2].mxu0 }
 0x12d   :  { %v250_v48 = vmul.f32 0.2, %v238_v44  ;;  %v242_v49 = vadd.f32 %v241_v47, %v116_v41  ;;  %v243_v50 = vpop.f32.mrb[3].mxu0  ;;  %vm246_vm0 = vcmp.gt.f32.partialorder %v238_v44, 0.0 }
 0x12e   :  { %v251_v51 = vmul.f32 0.2, %v240_v46  ;;  %v244_v52 = vadd.f32 %v243_v50, %v120_v42  ;;  %vm247_vm2 = vcmp.gt.f32.partialorder %v240_v46, 0.0 }
 0x12f   :  { %vm248_vm1 = vcmp.gt.f32.partialorder %v242_v49, 0.0  ;;  %v252_v53 = vmul.f32 0.2, %v242_v49  ;;  %v254_v55 = vsel %vm246_vm0, %v238_v44, %v250_v48  ;;  %v106_v44 = vld [vmem:[#allocation7 + $0x3] ss:$0 sm:$0xff] }
 0x130   :  { %v253_v54 = vmul.f32 0.2, %v244_v52  ;;  %vm249_vm3 = vcmp.gt.f32.partialorder %v244_v52, 0.0  ;;  %v255_v57 = vsel %vm247_vm2, %v240_v46, %v251_v51 }
 0x131   :  { %v256_v56 = vsel %vm248_vm1, %v242_v49, %v252_v53  ;;  %v107_v49 = vld [vmem:[#allocation7 + $0x4] ss:$0 sm:$0xff] }
 0x132   :  { %v257_v58 = vsel %vm249_vm3, %v244_v52, %v253_v54  ;;  %v258_v59 = vpack.c.bf16 %v256_v56, %v254_v55 }
 0x133   :  { %v259_v60 = vpack.c.bf16 %v257_v58, %v255_v57 }
 0x135   :  { %388 = vmatprep.mubr.bf16.mxu1 %v259_v60 }
 0x136   :  { %389 = vmatmul.mubr.bf16.vlgmr.msra.gmra.mrb[0].mxu1 %v258_v59 }
 0x209   :  { %v532_v61 = vpop.f32.mrb[0].mxu1 }
 0x20a   :  { %v533_v63 = vpop.f32.mrb[1].mxu1 }
 0x20b   :  { %v534_v0 = vadd.f32 %v533_v63, %v532_v61  ;;  %v535_v1 = vpop.f32.mrb[2].mxu1 }
 0x20c   :  { %v536_v2 = vpop.f32.mrb[3].mxu1 }
 0x20d   :  { %v391_v3 = vadd.f32 %v534_v0, %v104_v62  ;;  %v537_v4 = vadd.f32 %v536_v2, %v535_v1 }
 0x20f   :  { %v394_v5 = vadd.f32 %v537_v4, %v104_v62  ;;  %v397_v6 = vmul.f32 %v391_v3, %v391_v3  ;;  %v108_v62 = vld [vmem:[#allocation7 + $0x5] ss:$0 sm:$0xff] }
 0x211   :  { %v398_v7 = vmul.f32 %v394_v5, %v394_v5  ;;  %v399_v8 = vadd.f32 %v394_v5, %v391_v3 }
 0x213   :  { %v406_v9 = vadd.f32 %v398_v7, %v397_v6  ;;  %v400_v10 = vrot.slane %v399_v8, 4 }
 0x215   :  { %v401_v11 = vadd.f32 %v400_v10, %v399_v8  ;;  %v407_v12 = vrot.slane %v406_v9, 4 }
 0x217   :  { %v402_v13 = vrot.slane %v401_v11, 2  ;;  %v408_v14 = vadd.f32 %v407_v12, %v406_v9 }
 0x219   :  { %v403_v15 = vadd.f32 %v402_v13, %v401_v11  ;;  %v409_v16 = vrot.slane %v408_v14, 2 }
 0x21b   :  { %v404_v17 = vrot.slane %v403_v15, 1  ;;  %v410_v18 = vadd.f32 %v409_v16, %v408_v14 }
 0x21d   :  { %v405_v19 = vadd.f32 %v404_v17, %v403_v15  ;;  %v411_v20 = vrot.slane %v410_v18, 1 }
 0x21f   :  { %413 = vrot.lane.b32.xlu0 %v405_v19, %s689_s2  ;;  %v412_v21 = vadd.f32 %v411_v20, %v410_v18 }
 0x223   :  { %419 = vrot.lane.b32.xlu0 %v412_v21, %s689_s2 }
 0x291   :  { %v414_v22 = vpop.permute.xlu0 %413 }
 0x292   :  { %v415_v23 = vadd.f32 %v414_v22, %v405_v19 }
 0x294   :  { %416 = vrot.lane.b32.xlu1 %v415_v23, %s690_s21 }
 0x295   :  { %v420_v24 = vpop.permute.xlu0 %419 }
 0x296   :  { %v421_v25 = vadd.f32 %v420_v24, %v412_v21 }
 0x298   :  { %422 = vrot.lane.b32.xlu1 %v421_v25, %s690_s21 }
 0x306   :  { %v417_v26 = vpop.permute.xlu1 %416 }
 0x307   :  { %v418_v27 = vadd.f32 %v417_v26, %v415_v23 }
 0x309   :  { %v425_v28 = vmul.f32 0.015625, %v418_v27 }
 0x30a   :  { %v423_v29 = vpop.permute.xlu1 %422 }
 0x30b   :  { %v424_v30 = vadd.f32 %v423_v29, %v421_v25  ;;  %v427_v31 = vmul.f32 %v425_v28, %v425_v28  ;;  %v436_v37 = vrot.slane %v425_v28, %v755_v38 }
 0x30d   :  { %v426_v32 = vmul.f32 0.015625, %v424_v30  ;;  %v437_v41 = vsub.f32 %v391_v3, %v436_v37  ;;  %v438_v42 = vsub.f32 %v394_v5, %v436_v37 }
 0x30f   :  { %v428_v33 = vsub.f32 %v426_v32, %v427_v31 }
 0x311   :  { %v429_v34 = vmax.f32 %v428_v33, 0.0 }
 0x313   :  { %v430_v35 = vadd.f32 1e-05, %v429_v34 }
 0x315   :  { %587 = vrsqrt.f32 %v430_v35 }
 0x31f   :  { %v588_v39 = vpop.eup %587 }
 0x320   :  { %v432_v40 = vmul.f32 %v588_v39, %v105_v36 }
 0x322   :  { %v442_v43 = vrot.slane %v432_v40, %v755_v38 }
 0x324   :  { %v443_v45 = vmul.f32 %v442_v43, %v437_v41  ;;  %v444_v46 = vmul.f32 %v442_v43, %v438_v42 }
 0x326   :  { %v445_v47 = vadd.f32 %v443_v45, %v106_v44  ;;  %v446_v48 = vadd.f32 %v444_v46, %v106_v44 }
 0x328   :  { %vm447_vm4 = vcmp.gt.f32.partialorder %v445_v47, 0.0  ;;  %vm448_vm5 = vcmp.gt.f32.partialorder %v446_v48, 0.0  ;;  %v449_v50 = vmul.f32 0.2, %v445_v47  ;;  %v450_v51 = vmul.f32 0.2, %v446_v48 }
 0x32a   :  { %v451_v52 = vsel %vm447_vm4, %v445_v47, %v449_v50  ;;  %v452_v53 = vsel %vm448_vm5, %v446_v48, %v450_v51 }
 0x32b   :  { %v453_v54 = vmul.f32 %v451_v52, %v107_v49  ;;  %v454_v55 = vmul.f32 %v452_v53, %v107_v49 }
 0x32d   :  { %v455_v56 = vadd.f32 %v454_v55, %v453_v54 }
 0x32f   :  { %v456_v57 = vrot.slane %v455_v56, 4 }
 0x331   :  { %v457_v58 = vadd.f32 %v456_v57, %v455_v56 }
 0x333   :  { %v458_v59 = vrot.slane %v457_v58, 2 }
 0x335   :  { %v459_v60 = vadd.f32 %v458_v59, %v457_v58 }
 0x337   :  { %v460_v38 = vrot.slane %v459_v60, 1 }
 0x339   :  { %v461_v61 = vadd.f32 %v460_v38, %v459_v60 }
 0x33b   :  { %462 = vadd.xlane.f32.xlu0 %v461_v61 }
 0x3c8   :  { %v463_v63 = vpop.xlane.xlu0 %462 }
 0x3c9   :  { %v464_v0 = vmul.f32 0.015625, %v463_v63 }
 0x3cb   :  { %v465_v1 = vadd.f32 %v464_v0, %v108_v62 }
 0x3cd   :  { %467 = vst.msk [vmem:[#allocation8] sm:$0x1] %vm466_vm6, %v465_v1 }
 0x3ce   :  { %666 = shalt.err (!%p663_p0)
}
 0x3cf   :  { %s667_s28 = scalar_lea.hbm %s775_s3, 16 }
 0x3d0   :  { %p668_p1 = scmp.ne.s32.totalorder %s775_s3, %s667_s28  ;;  %p671_p2 = scmp.lt.u32.totalorder %s667_s28, %s775_s3 }
 0x3d2   :  { %p673_p3 = pnand %p671_p2, %p668_p1 }
 0x3d4   :  { %676 = shalt.err (!%p673_p3)
}
 0x3d5   :  { %477 = dma.vmem_to_hbm [thread:$0]  %s475_s23, 16, %s775_s3, [#allocation4]  }
 0x3d6   :  { %681 = dma.done.wait [#allocation4], 16  }
 0x3d7   :  { %682 = vsyncadd [#allocation4], 4294967280 }
 0x3d8   :  { %481 = vsyncpa [#allocation3], 1 }
 0x3d9   :  { %482 = vsyncpa [#allocation6], 1 }
 0x3da   :  { %483 = vsyncpa [#allocation4], 1 }

</bundles_post_ra>
